<compile_context>
chip_gen: v7x
topology: tpu7x:2x2x1
jax: 0.10.0
libtpu: 0.0.40
codegen_flags: <defaults>
</compile_context>

<pallas_src>
import jax
import jax.numpy as jnp
from jax.experimental import pallas as pl
from jax.experimental.pallas import tpu as pltpu


# ---------------------------------------------------------------------------
# Fused kernel: LSTM recurrence (PyTorch gate order i, f, g, o) + head
# (Linear -> softmax(-1) -> mean over tokens), everything resident in VMEM.
# ---------------------------------------------------------------------------
def fused_lstm_head_kernel(x_ref, h0_ref, c0_ref, act_ref,
                           wih_ref, whh_ref, blstm_ref,
                           wlin_ref, blin_ref, out_ref):
    # x_ref:    (S*B, I)  time-major flattened input (row = t*B + b)
    # h0_ref:   (B, H)    initial hidden
    # c0_ref:   (B, H)    initial cell
    # act_ref:  (B, A, H) action-history embedding tokens
    # wih_ref:  (I, 4H)   = weight_ih_l0.T
    # whh_ref:  (H, 4H)   = weight_hh_l0.T
    # blstm_ref:(1, 4H)   = bias_ih_l0 + bias_hh_l0
    # wlin_ref: (H, O)    = linear.weight.T
    # blin_ref: (1, O)    = linear.bias
    # out_ref:  (B, O)    mean-of-softmax output
    B, H = h0_ref.shape
    S = x_ref.shape[0] // B
    A = act_ref.shape[1]
    O = out_ref.shape[-1]
    T = S + A

    w_hh = whh_ref[...]
    w_lin = wlin_ref[...]
    b_lin = blin_ref[...]

    # Hoisted input projection: one matmul for all timesteps, off the serial
    # critical path (also folds the bias broadcast out of the loop).
    gx = jnp.dot(x_ref[...], wih_ref[...],
                 preferred_element_type=jnp.float32) + blstm_ref[...]  # (S*B, 4H)

    def softmax_last(logits):
        m = jnp.max(logits, axis=-1, keepdims=True)
        e = jnp.exp(logits - m)
        return e / jnp.sum(e, axis=-1, keepdims=True)

    h = h0_ref[...]
    c = c0_ref[...]
    acc = jnp.zeros((B, O), jnp.float32)

    # Fully-unrolled recurrence (S is small and static). Per step only the
    # h @ W_hh matmul and two full-vreg EUP passes sit on the latency chain;
    # the per-token head math can overlap with the next step.
    for t in range(S):
        gates = gx[t * B:(t + 1) * B, :] + jnp.dot(
            h, w_hh, preferred_element_type=jnp.float32)        # (B, 4H)
        sig = jax.nn.sigmoid(gates)   # one EUP pass over all 4H=128 lanes
        tnh = jnp.tanh(gates)         # one EUP pass
        i_g = sig[:, 0 * H:1 * H]
        f_g = sig[:, 1 * H:2 * H]
        g_g = tnh[:, 2 * H:3 * H]
        o_g = sig[:, 3 * H:4 * H]
        c = f_g * c + i_g * g_g
        h = o_g * jnp.tanh(c)
        # Fused head: accumulate softmax(h_t @ W_lin + b_lin) in-register.
        acc = acc + softmax_last(
            jnp.dot(h, w_lin, preferred_element_type=jnp.float32) + b_lin)

    # Action-embedding tokens (independent of the recurrence).
    logits_a = jnp.einsum('bah,ho->bao', act_ref[...], w_lin,
                          preferred_element_type=jnp.float32) + b_lin
    acc = acc + jnp.sum(softmax_last(logits_a), axis=1)

    out_ref[...] = acc * (1.0 / T)


# ---------------------------------------------------------------------------
# Wrapper: one pallas_call, whole arrays resident in VMEM (few tens of KiB).
# ---------------------------------------------------------------------------
@jax.jit
def lstm_encoding_history_forward(x, action_embedding, params):
    B, S, I = x.shape
    O = params['w_lin_t'].shape[-1]
    # Time-major flatten (row = t*B + b): a tiny XLA transpose so the kernel
    # reads each step's precomputed gates as a contiguous static slice.
    x_tm = jnp.transpose(x, (1, 0, 2)).reshape(S * B, I)
    return pl.pallas_call(
        fused_lstm_head_kernel,
        out_shape=jax.ShapeDtypeStruct((B, O), jnp.float32),
        in_specs=[pl.BlockSpec(memory_space=pltpu.MemorySpace.VMEM)] * 9,
        out_specs=pl.BlockSpec(memory_space=pltpu.MemorySpace.VMEM),
    )(x_tm, params['h0'], params['c0'], action_embedding,
      params['w_ih_t'], params['w_hh_t'], params['b_lstm'],
      params['w_lin_t'], params['b_lin'])


# ---------------------------------------------------------------------------
# Parameter init (mirrors nn.LSTM / nn.Linear uniform init; h0/c0 ~ randn).
# ---------------------------------------------------------------------------
def init_params(key, input_size, hidden_size, output_size, batch_size):
    ks = jax.random.split(key, 8)
    H = hidden_size
    bound = 1.0 / jnp.sqrt(H)
    w_ih = jax.random.uniform(ks[0], (4 * H, input_size), jnp.float32,
                              -bound, bound)
    w_hh = jax.random.uniform(ks[1], (4 * H, H), jnp.float32, -bound, bound)
    b_ih = jax.random.uniform(ks[2], (4 * H,), jnp.float32, -bound, bound)
    b_hh = jax.random.uniform(ks[3], (4 * H,), jnp.float32, -bound, bound)
    w_lin = jax.random.uniform(ks[4], (output_size, H), jnp.float32,
                               -bound, bound)
    b_lin = jax.random.uniform(ks[5], (output_size,), jnp.float32,
                               -bound, bound)
    # torch.randn(num_layers*num_directions=1, B, H) -> (B, H)
    h0 = jax.random.normal(ks[6], (1, batch_size, H), jnp.float32)[0]
    c0 = jax.random.normal(ks[7], (1, batch_size, H), jnp.float32)[0]
    return {
        'w_ih_t': w_ih.T,                     # (I, 4H)
        'w_hh_t': w_hh.T,                     # (H, 4H)
        'b_lstm': (b_ih + b_hh)[None, :],     # (1, 4H)
        'w_lin_t': w_lin.T,                   # (H, O)
        'b_lin': b_lin[None, :],              # (1, O)
        'h0': h0,                             # (B, H)
        'c0': c0,                             # (B, H)
    }


# ---------------------------------------------------------------------------
# Pure-JAX reference for correctness checking.
# ---------------------------------------------------------------------------
def reference_forward(x, action_embedding, params):
    B, S, I = x.shape
    H = params['h0'].shape[-1]
    h, c = params['h0'], params['c0']
    hs = []
    for t in range(S):
        gates = (x[:, t, :] @ params['w_ih_t'] + h @ params['w_hh_t']
                 + params['b_lstm'])
        i_g = jax.nn.sigmoid(gates[:, 0 * H:1 * H])
        f_g = jax.nn.sigmoid(gates[:, 1 * H:2 * H])
        g_g = jnp.tanh(gates[:, 2 * H:3 * H])
        o_g = jax.nn.sigmoid(gates[:, 3 * H:4 * H])
        c = f_g * c + i_g * g_g
        h = o_g * jnp.tanh(c)
        hs.append(h)
    seq = jnp.stack(hs, axis=1)                                 # (B, S, H)
    tok = jnp.concatenate([seq, action_embedding], axis=1)      # (B, T, H)
    logits = tok @ params['w_lin_t'] + params['b_lin']
    probs = jax.nn.softmax(logits, axis=-1)
    return probs.mean(axis=1)


if __name__ == "__main__":
    # Small shapes consistent with the module:
    #   x: (batch, num_predicate, seq_length) with seq_length == input_size
    batch = 2
    num_predicate = 8          # time axis for the LSTM (batch_first)
    input_size = 16            # == seq_length (last dim of x)
    hidden_size = 32
    output_size = 8
    num_action_tokens = 4      # action_embedding: (batch, 4, hidden_size)

    key = jax.random.PRNGKey(0)
    k_x, k_a, k_p = jax.random.split(key, 3)

    x = jax.random.normal(k_x, (batch, num_predicate, input_size), jnp.float32)
    action_embedding = jax.random.normal(
        k_a, (batch, num_action_tokens, hidden_size), jnp.float32)

    params = init_params(k_p, input_size, hidden_size, output_size, batch)

    out = lstm_encoding_history_forward(x, action_embedding, params)
    out = jax.block_until_ready(out)

    assert out.shape == (batch, output_size)
    # Rows are means of softmax distributions -> sum to 1.
    assert jnp.allclose(jnp.sum(out, axis=-1), 1.0, atol=1e-5)
    # Match the pure-JAX reference.
    ref = reference_forward(x, action_embedding, params)
    assert jnp.allclose(out, ref, atol=1e-5, rtol=1e-5)
    print("KERNEL_OK")
</pallas_src>

<mosaic_0001>
module attributes {stable_mosaic.version = 11 : i64} {
  func.func @fused_lstm_head_kernel(%arg0: memref<16x16xf32, #tpu.memory_space<vmem>>, %arg1: memref<2x32xf32, #tpu.memory_space<vmem>>, %arg2: memref<2x32xf32, #tpu.memory_space<vmem>>, %arg3: memref<2x4x32xf32, #tpu.memory_space<vmem>>, %arg4: memref<16x128xf32, #tpu.memory_space<vmem>>, %arg5: memref<32x128xf32, #tpu.memory_space<vmem>>, %arg6: memref<1x128xf32, #tpu.memory_space<vmem>>, %arg7: memref<32x8xf32, #tpu.memory_space<vmem>>, %arg8: memref<1x8xf32, #tpu.memory_space<vmem>>, %arg9: memref<2x8xf32, #tpu.memory_space<vmem>>) attributes {dimension_semantics = [], scalar_prefetch = 0 : i64, scratch_operands = 0 : i64, tpu.core_type = #tpu.core_type<tc>} {
    %c0 = arith.constant 0 : index
    %c0_0 = arith.constant 0 : index
    %0 = vector.load %arg5[%c0, %c0_0] : memref<32x128xf32, #tpu.memory_space<vmem>>, vector<32x128xf32>
    %c0_1 = arith.constant 0 : index
    %c0_2 = arith.constant 0 : index
    %1 = vector.load %arg7[%c0_1, %c0_2] : memref<32x8xf32, #tpu.memory_space<vmem>>, vector<32x8xf32>
    %c0_3 = arith.constant 0 : index
    %c0_4 = arith.constant 0 : index
    %2 = vector.load %arg8[%c0_3, %c0_4] : memref<1x8xf32, #tpu.memory_space<vmem>>, vector<1x8xf32>
    %c0_5 = arith.constant 0 : index
    %c0_6 = arith.constant 0 : index
    %3 = vector.load %arg0[%c0_5, %c0_6] : memref<16x16xf32, #tpu.memory_space<vmem>>, vector<16x16xf32>
    %c0_7 = arith.constant 0 : index
    %c0_8 = arith.constant 0 : index
    %4 = vector.load %arg4[%c0_7, %c0_8] : memref<16x128xf32, #tpu.memory_space<vmem>>, vector<16x128xf32>
    %cst = arith.constant dense<0.000000e+00> : vector<16x128xf32>
    %5 = tpu.matmul %3, %4, %cst {dimension_numbers = #tpu.dot_dimension_numbers<[1], [0], [0], [1], [0, 0, 1, 1], [], []>} : vector<16x16xf32>, vector<16x128xf32>, vector<16x128xf32> -> vector<16x128xf32>
    %c0_9 = arith.constant 0 : index
    %c0_10 = arith.constant 0 : index
    %6 = vector.load %arg6[%c0_9, %c0_10] : memref<1x128xf32, #tpu.memory_space<vmem>>, vector<1x128xf32>
    %7 = vector.broadcast %6 : vector<1x128xf32> to vector<16x128xf32>
    %8 = arith.addf %5, %7 : vector<16x128xf32>
    %c0_11 = arith.constant 0 : index
    %c0_12 = arith.constant 0 : index
    %9 = vector.load %arg1[%c0_11, %c0_12] : memref<2x32xf32, #tpu.memory_space<vmem>>, vector<2x32xf32>
    %c0_13 = arith.constant 0 : index
    %c0_14 = arith.constant 0 : index
    %10 = vector.load %arg2[%c0_13, %c0_14] : memref<2x32xf32, #tpu.memory_space<vmem>>, vector<2x32xf32>
    %cst_15 = arith.constant 0.000000e+00 : f32
    %11 = vector.broadcast %cst_15 : f32 to vector<2x8xf32>
    %12 = vector.extract_strided_slice %8 {offsets = [0, 0], sizes = [2, 128], strides = [1, 1]} : vector<16x128xf32> to vector<2x128xf32>
    %cst_16 = arith.constant dense<0.000000e+00> : vector<2x128xf32>
    %13 = tpu.matmul %9, %0, %cst_16 {dimension_numbers = #tpu.dot_dimension_numbers<[1], [0], [0], [1], [0, 0, 1, 1], [], []>} : vector<2x32xf32>, vector<32x128xf32>, vector<2x128xf32> -> vector<2x128xf32>
    %14 = arith.addf %12, %13 : vector<2x128xf32>
    %15 = arith.negf %14 : vector<2x128xf32>
    %16 = math.exp %15 : vector<2x128xf32>
    %cst_17 = arith.constant 1.000000e+00 : f32
    %17 = vector.broadcast %cst_17 : f32 to vector<2x128xf32>
    %18 = arith.addf %17, %16 : vector<2x128xf32>
    %19 = arith.divf %17, %18 : vector<2x128xf32>
    %20 = math.tanh %14 : vector<2x128xf32>
    %21 = vector.extract_strided_slice %19 {offsets = [0, 0], sizes = [2, 32], strides = [1, 1]} : vector<2x128xf32> to vector<2x32xf32>
    %22 = vector.extract_strided_slice %19 {offsets = [0, 32], sizes = [2, 32], strides = [1, 1]} : vector<2x128xf32> to vector<2x32xf32>
    %23 = vector.extract_strided_slice %20 {offsets = [0, 64], sizes = [2, 32], strides = [1, 1]} : vector<2x128xf32> to vector<2x32xf32>
    %24 = vector.extract_strided_slice %19 {offsets = [0, 96], sizes = [2, 32], strides = [1, 1]} : vector<2x128xf32> to vector<2x32xf32>
    %25 = arith.mulf %22, %10 : vector<2x32xf32>
    %26 = arith.mulf %21, %23 : vector<2x32xf32>
    %27 = arith.addf %25, %26 : vector<2x32xf32>
    %28 = math.tanh %27 : vector<2x32xf32>
    %29 = arith.mulf %24, %28 : vector<2x32xf32>
    %cst_18 = arith.constant dense<0.000000e+00> : vector<2x8xf32>
    %30 = tpu.matmul %29, %1, %cst_18 {dimension_numbers = #tpu.dot_dimension_numbers<[1], [0], [0], [1], [0, 0, 1, 1], [], []>} : vector<2x32xf32>, vector<32x8xf32>, vector<2x8xf32> -> vector<2x8xf32>
    %31 = vector.broadcast %2 : vector<1x8xf32> to vector<2x8xf32>
    %32 = arith.addf %30, %31 : vector<2x8xf32>
    %cst_19 = arith.constant dense<0xFF800000> : vector<2xf32>
    %33 = vector.multi_reduction <maximumf>, %32, %cst_19 [1] : vector<2x8xf32> to vector<2xf32>
    %34 = vector.shape_cast %33 : vector<2xf32> to vector<2x1xf32>
    %35 = vector.broadcast %34 : vector<2x1xf32> to vector<2x8xf32>
    %36 = arith.subf %32, %35 : vector<2x8xf32>
    %37 = math.exp %36 : vector<2x8xf32>
    %cst_20 = arith.constant dense<0.000000e+00> : vector<2xf32>
    %38 = vector.multi_reduction <add>, %37, %cst_20 [1] : vector<2x8xf32> to vector<2xf32>
    %39 = vector.shape_cast %38 : vector<2xf32> to vector<2x1xf32>
    %40 = vector.broadcast %39 : vector<2x1xf32> to vector<2x8xf32>
    %41 = arith.divf %37, %40 : vector<2x8xf32>
    %42 = arith.addf %11, %41 : vector<2x8xf32>
    %43 = vector.extract_strided_slice %8 {offsets = [2, 0], sizes = [2, 128], strides = [1, 1]} : vector<16x128xf32> to vector<2x128xf32>
    %cst_21 = arith.constant dense<0.000000e+00> : vector<2x128xf32>
    %44 = tpu.matmul %29, %0, %cst_21 {dimension_numbers = #tpu.dot_dimension_numbers<[1], [0], [0], [1], [0, 0, 1, 1], [], []>} : vector<2x32xf32>, vector<32x128xf32>, vector<2x128xf32> -> vector<2x128xf32>
    %45 = arith.addf %43, %44 : vector<2x128xf32>
    %46 = arith.negf %45 : vector<2x128xf32>
    %47 = math.exp %46 : vector<2x128xf32>
    %cst_22 = arith.constant 1.000000e+00 : f32
    %48 = vector.broadcast %cst_22 : f32 to vector<2x128xf32>
    %49 = arith.addf %48, %47 : vector<2x128xf32>
    %50 = arith.divf %48, %49 : vector<2x128xf32>
    %51 = math.tanh %45 : vector<2x128xf32>
    %52 = vector.extract_strided_slice %50 {offsets = [0, 0], sizes = [2, 32], strides = [1, 1]} : vector<2x128xf32> to vector<2x32xf32>
    %53 = vector.extract_strided_slice %50 {offsets = [0, 32], sizes = [2, 32], strides = [1, 1]} : vector<2x128xf32> to vector<2x32xf32>
    %54 = vector.extract_strided_slice %51 {offsets = [0, 64], sizes = [2, 32], strides = [1, 1]} : vector<2x128xf32> to vector<2x32xf32>
    %55 = vector.extract_strided_slice %50 {offsets = [0, 96], sizes = [2, 32], strides = [1, 1]} : vector<2x128xf32> to vector<2x32xf32>
    %56 = arith.mulf %53, %27 : vector<2x32xf32>
    %57 = arith.mulf %52, %54 : vector<2x32xf32>
    %58 = arith.addf %56, %57 : vector<2x32xf32>
    %59 = math.tanh %58 : vector<2x32xf32>
    %60 = arith.mulf %55, %59 : vector<2x32xf32>
    %cst_23 = arith.constant dense<0.000000e+00> : vector<2x8xf32>
    %61 = tpu.matmul %60, %1, %cst_23 {dimension_numbers = #tpu.dot_dimension_numbers<[1], [0], [0], [1], [0, 0, 1, 1], [], []>} : vector<2x32xf32>, vector<32x8xf32>, vector<2x8xf32> -> vector<2x8xf32>
    %62 = vector.broadcast %2 : vector<1x8xf32> to vector<2x8xf32>
    %63 = arith.addf %61, %62 : vector<2x8xf32>
    %cst_24 = arith.constant dense<0xFF800000> : vector<2xf32>
    %64 = vector.multi_reduction <maximumf>, %63, %cst_24 [1] : vector<2x8xf32> to vector<2xf32>
    %65 = vector.shape_cast %64 : vector<2xf32> to vector<2x1xf32>
    %66 = vector.broadcast %65 : vector<2x1xf32> to vector<2x8xf32>
    %67 = arith.subf %63, %66 : vector<2x8xf32>
    %68 = math.exp %67 : vector<2x8xf32>
    %cst_25 = arith.constant dense<0.000000e+00> : vector<2xf32>
    %69 = vector.multi_reduction <add>, %68, %cst_25 [1] : vector<2x8xf32> to vector<2xf32>
    %70 = vector.shape_cast %69 : vector<2xf32> to vector<2x1xf32>
    %71 = vector.broadcast %70 : vector<2x1xf32> to vector<2x8xf32>
    %72 = arith.divf %68, %71 : vector<2x8xf32>
    %73 = arith.addf %42, %72 : vector<2x8xf32>
    %74 = vector.extract_strided_slice %8 {offsets = [4, 0], sizes = [2, 128], strides = [1, 1]} : vector<16x128xf32> to vector<2x128xf32>
    %cst_26 = arith.constant dense<0.000000e+00> : vector<2x128xf32>
    %75 = tpu.matmul %60, %0, %cst_26 {dimension_numbers = #tpu.dot_dimension_numbers<[1], [0], [0], [1], [0, 0, 1, 1], [], []>} : vector<2x32xf32>, vector<32x128xf32>, vector<2x128xf32> -> vector<2x128xf32>
    %76 = arith.addf %74, %75 : vector<2x128xf32>
    %77 = arith.negf %76 : vector<2x128xf32>
    %78 = math.exp %77 : vector<2x128xf32>
    %cst_27 = arith.constant 1.000000e+00 : f32
    %79 = vector.broadcast %cst_27 : f32 to vector<2x128xf32>
    %80 = arith.addf %79, %78 : vector<2x128xf32>
    %81 = arith.divf %79, %80 : vector<2x128xf32>
    %82 = math.tanh %76 : vector<2x128xf32>
    %83 = vector.extract_strided_slice %81 {offsets = [0, 0], sizes = [2, 32], strides = [1, 1]} : vector<2x128xf32> to vector<2x32xf32>
    %84 = vector.extract_strided_slice %81 {offsets = [0, 32], sizes = [2, 32], strides = [1, 1]} : vector<2x128xf32> to vector<2x32xf32>
    %85 = vector.extract_strided_slice %82 {offsets = [0, 64], sizes = [2, 32], strides = [1, 1]} : vector<2x128xf32> to vector<2x32xf32>
    %86 = vector.extract_strided_slice %81 {offsets = [0, 96], sizes = [2, 32], strides = [1, 1]} : vector<2x128xf32> to vector<2x32xf32>
    %87 = arith.mulf %84, %58 : vector<2x32xf32>
    %88 = arith.mulf %83, %85 : vector<2x32xf32>
    %89 = arith.addf %87, %88 : vector<2x32xf32>
    %90 = math.tanh %89 : vector<2x32xf32>
    %91 = arith.mulf %86, %90 : vector<2x32xf32>
    %cst_28 = arith.constant dense<0.000000e+00> : vector<2x8xf32>
    %92 = tpu.matmul %91, %1, %cst_28 {dimension_numbers = #tpu.dot_dimension_numbers<[1], [0], [0], [1], [0, 0, 1, 1], [], []>} : vector<2x32xf32>, vector<32x8xf32>, vector<2x8xf32> -> vector<2x8xf32>
    %93 = vector.broadcast %2 : vector<1x8xf32> to vector<2x8xf32>
    %94 = arith.addf %92, %93 : vector<2x8xf32>
    %cst_29 = arith.constant dense<0xFF800000> : vector<2xf32>
    %95 = vector.multi_reduction <maximumf>, %94, %cst_29 [1] : vector<2x8xf32> to vector<2xf32>
    %96 = vector.shape_cast %95 : vector<2xf32> to vector<2x1xf32>
    %97 = vector.broadcast %96 : vector<2x1xf32> to vector<2x8xf32>
    %98 = arith.subf %94, %97 : vector<2x8xf32>
    %99 = math.exp %98 : vector<2x8xf32>
    %cst_30 = arith.constant dense<0.000000e+00> : vector<2xf32>
    %100 = vector.multi_reduction <add>, %99, %cst_30 [1] : vector<2x8xf32> to vector<2xf32>
    %101 = vector.shape_cast %100 : vector<2xf32> to vector<2x1xf32>
    %102 = vector.broadcast %101 : vector<2x1xf32> to vector<2x8xf32>
    %103 = arith.divf %99, %102 : vector<2x8xf32>
    %104 = arith.addf %73, %103 : vector<2x8xf32>
    %105 = vector.extract_strided_slice %8 {offsets = [6, 0], sizes = [2, 128], strides = [1, 1]} : vector<16x128xf32> to vector<2x128xf32>
    %cst_31 = arith.constant dense<0.000000e+00> : vector<2x128xf32>
    %106 = tpu.matmul %91, %0, %cst_31 {dimension_numbers = #tpu.dot_dimension_numbers<[1], [0], [0], [1], [0, 0, 1, 1], [], []>} : vector<2x32xf32>, vector<32x128xf32>, vector<2x128xf32> -> vector<2x128xf32>
    %107 = arith.addf %105, %106 : vector<2x128xf32>
    %108 = arith.negf %107 : vector<2x128xf32>
    %109 = math.exp %108 : vector<2x128xf32>
    %cst_32 = arith.constant 1.000000e+00 : f32
    %110 = vector.broadcast %cst_32 : f32 to vector<2x128xf32>
    %111 = arith.addf %110, %109 : vector<2x128xf32>
    %112 = arith.divf %110, %111 : vector<2x128xf32>
    %113 = math.tanh %107 : vector<2x128xf32>
    %114 = vector.extract_strided_slice %112 {offsets = [0, 0], sizes = [2, 32], strides = [1, 1]} : vector<2x128xf32> to vector<2x32xf32>
    %115 = vector.extract_strided_slice %112 {offsets = [0, 32], sizes = [2, 32], strides = [1, 1]} : vector<2x128xf32> to vector<2x32xf32>
    %116 = vector.extract_strided_slice %113 {offsets = [0, 64], sizes = [2, 32], strides = [1, 1]} : vector<2x128xf32> to vector<2x32xf32>
    %117 = vector.extract_strided_slice %112 {offsets = [0, 96], sizes = [2, 32], strides = [1, 1]} : vector<2x128xf32> to vector<2x32xf32>
    %118 = arith.mulf %115, %89 : vector<2x32xf32>
    %119 = arith.mulf %114, %116 : vector<2x32xf32>
    %120 = arith.addf %118, %119 : vector<2x32xf32>
    %121 = math.tanh %120 : vector<2x32xf32>
    %122 = arith.mulf %117, %121 : vector<2x32xf32>
    %cst_33 = arith.constant dense<0.000000e+00> : vector<2x8xf32>
    %123 = tpu.matmul %122, %1, %cst_33 {dimension_numbers = #tpu.dot_dimension_numbers<[1], [0], [0], [1], [0, 0, 1, 1], [], []>} : vector<2x32xf32>, vector<32x8xf32>, vector<2x8xf32> -> vector<2x8xf32>
    %124 = vector.broadcast %2 : vector<1x8xf32> to vector<2x8xf32>
    %125 = arith.addf %123, %124 : vector<2x8xf32>
    %cst_34 = arith.constant dense<0xFF800000> : vector<2xf32>
    %126 = vector.multi_reduction <maximumf>, %125, %cst_34 [1] : vector<2x8xf32> to vector<2xf32>
    %127 = vector.shape_cast %126 : vector<2xf32> to vector<2x1xf32>
    %128 = vector.broadcast %127 : vector<2x1xf32> to vector<2x8xf32>
    %129 = arith.subf %125, %128 : vector<2x8xf32>
    %130 = math.exp %129 : vector<2x8xf32>
    %cst_35 = arith.constant dense<0.000000e+00> : vector<2xf32>
    %131 = vector.multi_reduction <add>, %130, %cst_35 [1] : vector<2x8xf32> to vector<2xf32>
    %132 = vector.shape_cast %131 : vector<2xf32> to vector<2x1xf32>
    %133 = vector.broadcast %132 : vector<2x1xf32> to vector<2x8xf32>
    %134 = arith.divf %130, %133 : vector<2x8xf32>
    %135 = arith.addf %104, %134 : vector<2x8xf32>
    %136 = vector.extract_strided_slice %8 {offsets = [8, 0], sizes = [2, 128], strides = [1, 1]} : vector<16x128xf32> to vector<2x128xf32>
    %cst_36 = arith.constant dense<0.000000e+00> : vector<2x128xf32>
    %137 = tpu.matmul %122, %0, %cst_36 {dimension_numbers = #tpu.dot_dimension_numbers<[1], [0], [0], [1], [0, 0, 1, 1], [], []>} : vector<2x32xf32>, vector<32x128xf32>, vector<2x128xf32> -> vector<2x128xf32>
    %138 = arith.addf %136, %137 : vector<2x128xf32>
    %139 = arith.negf %138 : vector<2x128xf32>
    %140 = math.exp %139 : vector<2x128xf32>
    %cst_37 = arith.constant 1.000000e+00 : f32
    %141 = vector.broadcast %cst_37 : f32 to vector<2x128xf32>
    %142 = arith.addf %141, %140 : vector<2x128xf32>
    %143 = arith.divf %141, %142 : vector<2x128xf32>
    %144 = math.tanh %138 : vector<2x128xf32>
    %145 = vector.extract_strided_slice %143 {offsets = [0, 0], sizes = [2, 32], strides = [1, 1]} : vector<2x128xf32> to vector<2x32xf32>
    %146 = vector.extract_strided_slice %143 {offsets = [0, 32], sizes = [2, 32], strides = [1, 1]} : vector<2x128xf32> to vector<2x32xf32>
    %147 = vector.extract_strided_slice %144 {offsets = [0, 64], sizes = [2, 32], strides = [1, 1]} : vector<2x128xf32> to vector<2x32xf32>
    %148 = vector.extract_strided_slice %143 {offsets = [0, 96], sizes = [2, 32], strides = [1, 1]} : vector<2x128xf32> to vector<2x32xf32>
    %149 = arith.mulf %146, %120 : vector<2x32xf32>
    %150 = arith.mulf %145, %147 : vector<2x32xf32>
    %151 = arith.addf %149, %150 : vector<2x32xf32>
    %152 = math.tanh %151 : vector<2x32xf32>
    %153 = arith.mulf %148, %152 : vector<2x32xf32>
    %cst_38 = arith.constant dense<0.000000e+00> : vector<2x8xf32>
    %154 = tpu.matmul %153, %1, %cst_38 {dimension_numbers = #tpu.dot_dimension_numbers<[1], [0], [0], [1], [0, 0, 1, 1], [], []>} : vector<2x32xf32>, vector<32x8xf32>, vector<2x8xf32> -> vector<2x8xf32>
    %155 = vector.broadcast %2 : vector<1x8xf32> to vector<2x8xf32>
    %156 = arith.addf %154, %155 : vector<2x8xf32>
    %cst_39 = arith.constant dense<0xFF800000> : vector<2xf32>
    %157 = vector.multi_reduction <maximumf>, %156, %cst_39 [1] : vector<2x8xf32> to vector<2xf32>
    %158 = vector.shape_cast %157 : vector<2xf32> to vector<2x1xf32>
    %159 = vector.broadcast %158 : vector<2x1xf32> to vector<2x8xf32>
    %160 = arith.subf %156, %159 : vector<2x8xf32>
    %161 = math.exp %160 : vector<2x8xf32>
    %cst_40 = arith.constant dense<0.000000e+00> : vector<2xf32>
    %162 = vector.multi_reduction <add>, %161, %cst_40 [1] : vector<2x8xf32> to vector<2xf32>
    %163 = vector.shape_cast %162 : vector<2xf32> to vector<2x1xf32>
    %164 = vector.broadcast %163 : vector<2x1xf32> to vector<2x8xf32>
    %165 = arith.divf %161, %164 : vector<2x8xf32>
    %166 = arith.addf %135, %165 : vector<2x8xf32>
    %167 = vector.extract_strided_slice %8 {offsets = [10, 0], sizes = [2, 128], strides = [1, 1]} : vector<16x128xf32> to vector<2x128xf32>
    %cst_41 = arith.constant dense<0.000000e+00> : vector<2x128xf32>
    %168 = tpu.matmul %153, %0, %cst_41 {dimension_numbers = #tpu.dot_dimension_numbers<[1], [0], [0], [1], [0, 0, 1, 1], [], []>} : vector<2x32xf32>, vector<32x128xf32>, vector<2x128xf32> -> vector<2x128xf32>
    %169 = arith.addf %167, %168 : vector<2x128xf32>
    %170 = arith.negf %169 : vector<2x128xf32>
    %171 = math.exp %170 : vector<2x128xf32>
    %cst_42 = arith.constant 1.000000e+00 : f32
    %172 = vector.broadcast %cst_42 : f32 to vector<2x128xf32>
    %173 = arith.addf %172, %171 : vector<2x128xf32>
    %174 = arith.divf %172, %173 : vector<2x128xf32>
    %175 = math.tanh %169 : vector<2x128xf32>
    %176 = vector.extract_strided_slice %174 {offsets = [0, 0], sizes = [2, 32], strides = [1, 1]} : vector<2x128xf32> to vector<2x32xf32>
    %177 = vector.extract_strided_slice %174 {offsets = [0, 32], sizes = [2, 32], strides = [1, 1]} : vector<2x128xf32> to vector<2x32xf32>
    %178 = vector.extract_strided_slice %175 {offsets = [0, 64], sizes = [2, 32], strides = [1, 1]} : vector<2x128xf32> to vector<2x32xf32>
    %179 = vector.extract_strided_slice %174 {offsets = [0, 96], sizes = [2, 32], strides = [1, 1]} : vector<2x128xf32> to vector<2x32xf32>
    %180 = arith.mulf %177, %151 : vector<2x32xf32>
    %181 = arith.mulf %176, %178 : vector<2x32xf32>
    %182 = arith.addf %180, %181 : vector<2x32xf32>
    %183 = math.tanh %182 : vector<2x32xf32>
    %184 = arith.mulf %179, %183 : vector<2x32xf32>
    %cst_43 = arith.constant dense<0.000000e+00> : vector<2x8xf32>
    %185 = tpu.matmul %184, %1, %cst_43 {dimension_numbers = #tpu.dot_dimension_numbers<[1], [0], [0], [1], [0, 0, 1, 1], [], []>} : vector<2x32xf32>, vector<32x8xf32>, vector<2x8xf32> -> vector<2x8xf32>
    %186 = vector.broadcast %2 : vector<1x8xf32> to vector<2x8xf32>
    %187 = arith.addf %185, %186 : vector<2x8xf32>
    %cst_44 = arith.constant dense<0xFF800000> : vector<2xf32>
    %188 = vector.multi_reduction <maximumf>, %187, %cst_44 [1] : vector<2x8xf32> to vector<2xf32>
    %189 = vector.shape_cast %188 : vector<2xf32> to vector<2x1xf32>
    %190 = vector.broadcast %189 : vector<2x1xf32> to vector<2x8xf32>
    %191 = arith.subf %187, %190 : vector<2x8xf32>
    %192 = math.exp %191 : vector<2x8xf32>
    %cst_45 = arith.constant dense<0.000000e+00> : vector<2xf32>
    %193 = vector.multi_reduction <add>, %192, %cst_45 [1] : vector<2x8xf32> to vector<2xf32>
    %194 = vector.shape_cast %193 : vector<2xf32> to vector<2x1xf32>
    %195 = vector.broadcast %194 : vector<2x1xf32> to vector<2x8xf32>
    %196 = arith.divf %192, %195 : vector<2x8xf32>
    %197 = arith.addf %166, %196 : vector<2x8xf32>
    %198 = vector.extract_strided_slice %8 {offsets = [12, 0], sizes = [2, 128], strides = [1, 1]} : vector<16x128xf32> to vector<2x128xf32>
    %cst_46 = arith.constant dense<0.000000e+00> : vector<2x128xf32>
    %199 = tpu.matmul %184, %0, %cst_46 {dimension_numbers = #tpu.dot_dimension_numbers<[1], [0], [0], [1], [0, 0, 1, 1], [], []>} : vector<2x32xf32>, vector<32x128xf32>, vector<2x128xf32> -> vector<2x128xf32>
    %200 = arith.addf %198, %199 : vector<2x128xf32>
    %201 = arith.negf %200 : vector<2x128xf32>
    %202 = math.exp %201 : vector<2x128xf32>
    %cst_47 = arith.constant 1.000000e+00 : f32
    %203 = vector.broadcast %cst_47 : f32 to vector<2x128xf32>
    %204 = arith.addf %203, %202 : vector<2x128xf32>
    %205 = arith.divf %203, %204 : vector<2x128xf32>
    %206 = math.tanh %200 : vector<2x128xf32>
    %207 = vector.extract_strided_slice %205 {offsets = [0, 0], sizes = [2, 32], strides = [1, 1]} : vector<2x128xf32> to vector<2x32xf32>
    %208 = vector.extract_strided_slice %205 {offsets = [0, 32], sizes = [2, 32], strides = [1, 1]} : vector<2x128xf32> to vector<2x32xf32>
    %209 = vector.extract_strided_slice %206 {offsets = [0, 64], sizes = [2, 32], strides = [1, 1]} : vector<2x128xf32> to vector<2x32xf32>
    %210 = vector.extract_strided_slice %205 {offsets = [0, 96], sizes = [2, 32], strides = [1, 1]} : vector<2x128xf32> to vector<2x32xf32>
    %211 = arith.mulf %208, %182 : vector<2x32xf32>
    %212 = arith.mulf %207, %209 : vector<2x32xf32>
    %213 = arith.addf %211, %212 : vector<2x32xf32>
    %214 = math.tanh %213 : vector<2x32xf32>
    %215 = arith.mulf %210, %214 : vector<2x32xf32>
    %cst_48 = arith.constant dense<0.000000e+00> : vector<2x8xf32>
    %216 = tpu.matmul %215, %1, %cst_48 {dimension_numbers = #tpu.dot_dimension_numbers<[1], [0], [0], [1], [0, 0, 1, 1], [], []>} : vector<2x32xf32>, vector<32x8xf32>, vector<2x8xf32> -> vector<2x8xf32>
    %217 = vector.broadcast %2 : vector<1x8xf32> to vector<2x8xf32>
    %218 = arith.addf %216, %217 : vector<2x8xf32>
    %cst_49 = arith.constant dense<0xFF800000> : vector<2xf32>
    %219 = vector.multi_reduction <maximumf>, %218, %cst_49 [1] : vector<2x8xf32> to vector<2xf32>
    %220 = vector.shape_cast %219 : vector<2xf32> to vector<2x1xf32>
    %221 = vector.broadcast %220 : vector<2x1xf32> to vector<2x8xf32>
    %222 = arith.subf %218, %221 : vector<2x8xf32>
    %223 = math.exp %222 : vector<2x8xf32>
    %cst_50 = arith.constant dense<0.000000e+00> : vector<2xf32>
    %224 = vector.multi_reduction <add>, %223, %cst_50 [1] : vector<2x8xf32> to vector<2xf32>
    %225 = vector.shape_cast %224 : vector<2xf32> to vector<2x1xf32>
    %226 = vector.broadcast %225 : vector<2x1xf32> to vector<2x8xf32>
    %227 = arith.divf %223, %226 : vector<2x8xf32>
    %228 = arith.addf %197, %227 : vector<2x8xf32>
    %229 = vector.extract_strided_slice %8 {offsets = [14, 0], sizes = [2, 128], strides = [1, 1]} : vector<16x128xf32> to vector<2x128xf32>
    %cst_51 = arith.constant dense<0.000000e+00> : vector<2x128xf32>
    %230 = tpu.matmul %215, %0, %cst_51 {dimension_numbers = #tpu.dot_dimension_numbers<[1], [0], [0], [1], [0, 0, 1, 1], [], []>} : vector<2x32xf32>, vector<32x128xf32>, vector<2x128xf32> -> vector<2x128xf32>
    %231 = arith.addf %229, %230 : vector<2x128xf32>
    %232 = arith.negf %231 : vector<2x128xf32>
    %233 = math.exp %232 : vector<2x128xf32>
    %cst_52 = arith.constant 1.000000e+00 : f32
    %234 = vector.broadcast %cst_52 : f32 to vector<2x128xf32>
    %235 = arith.addf %234, %233 : vector<2x128xf32>
    %236 = arith.divf %234, %235 : vector<2x128xf32>
    %237 = math.tanh %231 : vector<2x128xf32>
    %238 = vector.extract_strided_slice %236 {offsets = [0, 0], sizes = [2, 32], strides = [1, 1]} : vector<2x128xf32> to vector<2x32xf32>
    %239 = vector.extract_strided_slice %236 {offsets = [0, 32], sizes = [2, 32], strides = [1, 1]} : vector<2x128xf32> to vector<2x32xf32>
    %240 = vector.extract_strided_slice %237 {offsets = [0, 64], sizes = [2, 32], strides = [1, 1]} : vector<2x128xf32> to vector<2x32xf32>
    %241 = vector.extract_strided_slice %236 {offsets = [0, 96], sizes = [2, 32], strides = [1, 1]} : vector<2x128xf32> to vector<2x32xf32>
    %242 = arith.mulf %239, %213 : vector<2x32xf32>
    %243 = arith.mulf %238, %240 : vector<2x32xf32>
    %244 = arith.addf %242, %243 : vector<2x32xf32>
    %245 = math.tanh %244 : vector<2x32xf32>
    %246 = arith.mulf %241, %245 : vector<2x32xf32>
    %cst_53 = arith.constant dense<0.000000e+00> : vector<2x8xf32>
    %247 = tpu.matmul %246, %1, %cst_53 {dimension_numbers = #tpu.dot_dimension_numbers<[1], [0], [0], [1], [0, 0, 1, 1], [], []>} : vector<2x32xf32>, vector<32x8xf32>, vector<2x8xf32> -> vector<2x8xf32>
    %248 = vector.broadcast %2 : vector<1x8xf32> to vector<2x8xf32>
    %249 = arith.addf %247, %248 : vector<2x8xf32>
    %cst_54 = arith.constant dense<0xFF800000> : vector<2xf32>
    %250 = vector.multi_reduction <maximumf>, %249, %cst_54 [1] : vector<2x8xf32> to vector<2xf32>
    %251 = vector.shape_cast %250 : vector<2xf32> to vector<2x1xf32>
    %252 = vector.broadcast %251 : vector<2x1xf32> to vector<2x8xf32>
    %253 = arith.subf %249, %252 : vector<2x8xf32>
    %254 = math.exp %253 : vector<2x8xf32>
    %cst_55 = arith.constant dense<0.000000e+00> : vector<2xf32>
    %255 = vector.multi_reduction <add>, %254, %cst_55 [1] : vector<2x8xf32> to vector<2xf32>
    %256 = vector.shape_cast %255 : vector<2xf32> to vector<2x1xf32>
    %257 = vector.broadcast %256 : vector<2x1xf32> to vector<2x8xf32>
    %258 = arith.divf %254, %257 : vector<2x8xf32>
    %259 = arith.addf %228, %258 : vector<2x8xf32>
    %c0_56 = arith.constant 0 : index
    %c0_57 = arith.constant 0 : index
    %c0_58 = arith.constant 0 : index
    %260 = vector.load %arg3[%c0_56, %c0_57, %c0_58] : memref<2x4x32xf32, #tpu.memory_space<vmem>>, vector<2x4x32xf32>
    "tpu.trace_start"() <{level = 10 : i32, message = "bah,ho->bao"}> : () -> ()
    %cst_59 = arith.constant dense<0.000000e+00> : vector<2x4x8xf32>
    %261 = tpu.matmul %260, %1, %cst_59 {dimension_numbers = #tpu.dot_dimension_numbers<[2], [0], [0, 1], [1], [0, 0, 0, 1, 1, 1], [], []>} : vector<2x4x32xf32>, vector<32x8xf32>, vector<2x4x8xf32> -> vector<2x4x8xf32>
    "tpu.trace_stop"() : () -> ()
    %262 = vector.shape_cast %2 : vector<1x8xf32> to vector<1x1x8xf32>
    %263 = vector.broadcast %262 : vector<1x1x8xf32> to vector<2x4x8xf32>
    %264 = arith.addf %261, %263 : vector<2x4x8xf32>
    %cst_60 = arith.constant dense<0xFF800000> : vector<2x4xf32>
    %265 = vector.multi_reduction <maximumf>, %264, %cst_60 [2] : vector<2x4x8xf32> to vector<2x4xf32>
    %266 = vector.shape_cast %265 : vector<2x4xf32> to vector<2x4x1xf32>
    %267 = vector.broadcast %266 : vector<2x4x1xf32> to vector<2x4x8xf32>
    %268 = arith.subf %264, %267 : vector<2x4x8xf32>
    %269 = math.exp %268 : vector<2x4x8xf32>
    %cst_61 = arith.constant dense<0.000000e+00> : vector<2x4xf32>
    %270 = vector.multi_reduction <add>, %269, %cst_61 [2] : vector<2x4x8xf32> to vector<2x4xf32>
    %271 = vector.shape_cast %270 : vector<2x4xf32> to vector<2x4x1xf32>
    %272 = vector.broadcast %271 : vector<2x4x1xf32> to vector<2x4x8xf32>
    %273 = arith.divf %269, %272 : vector<2x4x8xf32>
    %cst_62 = arith.constant dense<0.000000e+00> : vector<2x8xf32>
    %274 = vector.multi_reduction <add>, %273, %cst_62 [1] : vector<2x4x8xf32> to vector<2x8xf32>
    %275 = arith.addf %259, %274 : vector<2x8xf32>
    %cst_63 = arith.constant 0.0833333358 : f32
    %276 = vector.broadcast %cst_63 : f32 to vector<2x8xf32>
    %277 = arith.mulf %275, %276 : vector<2x8xf32>
    %c0_64 = arith.constant 0 : index
    %c0_65 = arith.constant 0 : index
    %278 = vector.load %arg9[%c0_64, %c0_65] : memref<2x8xf32, #tpu.memory_space<vmem>>, vector<2x8xf32>
    tpu.vector_store %arg9[%c0_64, %c0_65], %277 {strides = array<i32>} : memref<2x8xf32, #tpu.memory_space<vmem>>, vector<2x8xf32>,
    return
  }
}

</mosaic_0001>

<bundles_post_ra>
// kernel: lstm_encoding_history_forward.1
= control target key start
LH: loop header
LB: loop body
LE: loop exit
PB: predicated region body
PF: predicated region fallthrough
CT: control target
= control target key end

     0   :  { %vm53_vm0 = vcmask 130048   ;;  %v2347_v3 = vmov 0.0|0.0   ;;  %vm2348_vm1 = vmmov 0   ;;  %v2349_v10 = vmov 0.0   ;;  %s2722_s0 = inlined_call_operand.vmem [shape: f32[16,16], index: 0, kind: input, shape index: {}]   ;;  %s2723_s1 = inlined_call_operand.vmem [shape: f32[2,32], index: 1, kind: input, shape index: {}]   ;;  %s2724_s2 = inlined_call_operand.vmem [shape: f32[2,32], index: 2, kind: input, shape index: {}]   ;;  %s2725_s3 = inlined_call_operand.vmem [shape: f32[2,4,32], index: 3, kind: input, shape index: {}]   ;;  %s2726_s4 = inlined_call_operand.vmem [shape: f32[16,128], index: 4, kind: input, shape index: {}]   ;;  %s2727_s5 = inlined_call_operand.vmem [shape: f32[32,128], index: 5, kind: input, shape index: {}]   ;;  %s2728_s6 = inlined_call_operand.vmem [shape: f32[1,128], index: 6, kind: input, shape index: {}]   ;;  %s2729_s7 = inlined_call_operand.vmem [shape: f32[32,8], index: 7, kind: input, shape index: {}]   ;;  %s2730_s8 = inlined_call_operand.vmem [shape: f32[1,8], index: 8, kind: input, shape index: {}]   ;;  %s2731_s9 = inlined_call_operand.hbm [shape: f32[2,8], index: 9, kind: output, shape index: {}]  }
   0x1   :  { %v44_v0 = vld [vmem:[%s2726_s4] sm:$0xff]  ;;  %v45_v1 = vld [vmem:[%s2726_s4 + $0x8] sm:$0xff]  ;;  %2110 = vmatprep.subr.bf16.mxu1 %v2347_v3  ;;  %v35_v8 = vld [vmem:[%s2727_s5 + $0x10] sm:$0xff]  ;;  %1927 = vmatprep.mubr.msk.f32.mxu1 %vm2348_vm1, %v2349_v10 }
   0x2   :  { %v33_v2 = vld [vmem:[%s2727_s5] sm:$0xff]  ;;  %v2106_v4 = vpack.c.bf16 %v45_v1, %v44_v0  ;;  %v34_v5 = vld [vmem:[%s2727_s5 + $0x8] sm:$0xff]  ;;  %v36_v9 = vld [vmem:[%s2727_s5 + $0x18] sm:$0xff] }
   0x3   :  { %v42_v6 = vld [vmem:[%s2722_s0] sm:$0xff]  ;;  %v2419_v7 = vpack.c.bf16 %v34_v5, %v33_v2 }
   0x4   :  { %1916 = vmatprep.mubr.msk.f32.mxu0 %vm53_vm0, %v42_v6  ;;  %2107 = vmatprep.subr.bf16.mxu0 %v2106_v4 }
   0x5   :  { %14 = vsyncpa [#allocation3], 0  ;;  %2112 = vmatpush3.bf16.msra.mxu1 %v2419_v7  ;;  %2109 = vmatpush3.bf16.msra.mxu0 %v2106_v4  ;;  %v43_v11 = vld [vmem:[%s2722_s0 + $0x8] sm:$0xff]  ;;  %v2434_v12 = vpack.c.bf16 %v36_v9, %v35_v8  ;;  %v135_v13 = vld [vmem:[%s2723_s1] sm:$0x3]  ;;  %vm137_vm2 = vcmask 261120  }
   0x6   :  { %2113 = vmatprep.subr.bf16.mxu1 %v2347_v3  ;;  %2116 = vmatprep.subr.bf16.mxu0 %v2347_v3  ;;  %v1794_v14 = vld [vmem:[%s2728_s6] ss:$0 sm:$0xff]  ;;  %s2350_s25 = smov 64   ;;  %s2351_s6 = smov 32   ;;  %v38_v35 = vld [vmem:[%s2729_s7 + $0x8] sm:$0xff]  ;;  %v39_v36 = vld [vmem:[%s2729_s7 + $0x10] sm:$0xff] }
   0x7   :  { %v136_v23 = vld [vmem:[%s2724_s2] sm:$0x3]  ;;  %v40_v38 = vld [vmem:[%s2729_s7 + $0x18] sm:$0xff]  ;;  %vm321_vm3 = vcmask 58368   ;;  %vm1735_vm4 = vcmask 60416   ;;  %vm1774_vm5 = vcmask 1041409  }
   0x8   :  { %1917 = vmatmul.mubr.msk.f32.vlgmr.msra.gmra.mrb[0].mxu0 %vm53_vm0, %v43_v11  ;;  %v37_v34 = vld [vmem:[%s2729_s7] sm:$0xff]  ;;  %v2482_v39 = vpack.c.bf16 %v40_v38, %v39_v36 }
   0x9   :  { %2115 = vmatpush3.bf16.msra.mxu1 %v2434_v12  ;;  %1938 = vmatprep.mubr.msk.f32.mxu0 %vm2348_vm1, %v2349_v10  ;;  %v2476_v37 = vpack.c.bf16 %v38_v35, %v37_v34 }
   0xa   :  { %2122 = vmatprep.subr.bf16.mxu1 %v2347_v3 }
   0xb   :  { %2118 = vmatpush3.bf16.msra.mxu0 %v2476_v37 }
   0xc   :  { %1928 = vmatmul.mubr.msk.f32.vlgmr.msra.gmra.mrb[0].mxu1 %vm137_vm2, %v135_v13  ;;  %2119 = vmatprep.subr.bf16.mxu0 %v2347_v3 }
   0xd   :  { %2124 = vmatpush3.bf16.msra.mxu1 %v2419_v7  ;;  %1949 = vmatprep.mubr.msk.f32.mxu1 %vm2348_vm1, %v2349_v10 }
   0xe   :  { %2125 = vmatprep.subr.bf16.mxu1 %v2347_v3 }
   0xf   :  { %2121 = vmatpush3.bf16.msra.mxu0 %v2482_v39 }
  0x10   :  { %2128 = vmatprep.subr.bf16.mxu0 %v2347_v3 }
  0x11   :  { %2127 = vmatpush3.bf16.msra.mxu1 %v2434_v12 }
  0x12   :  { %2134 = vmatprep.subr.bf16.mxu1 %v2347_v3 }
  0xdb   :  { %v1918_v15 = vpop.f32.mrb[0].mxu0 }
  0xdc   :  { %v2456_v16 = vadd.f32 %v1918_v15, %v1794_v14  ;;  %v126_v17 = vpop.f32.mrb[1].mxu0 }
  0xdd   :  { %v2458_v18 = vadd.f32 %v1794_v14, %v126_v17 }
  0xdf   :  { %v207_v19 = vpop.f32.mrb[0].mxu1 }
  0xe0   :  { %v211_v20 = vadd.f32 %v207_v19, %v2458_v18  ;;  %v1929_v21 = vpop.f32.mrb[1].mxu1 }
  0xe2   :  { %2219 = vtanh.f32 %v211_v20  ;;  %v1798_v24 = vmul.f32 -1.442695, %v211_v20 }
  0xe4   :  { %2221 = vpow2.f32 %v1798_v24 }
  0xec   :  { %v2220_v22 = vpop.eup %2219 }
  0xed   :  { %225 = vrot.lane.b32.xlu0 %v2220_v22, %s2350_s25 }
  0xee   :  { %v2222_v25 = vpop.eup %2221 }
  0xef   :  { %v215_v26 = vadd.f32 1.0, %v2222_v25 }
  0xf1   :  { %220 = vrot.lane.b32.xlu0 %v136_v23, %s2351_s6  ;;  %2223 = vrcp.f32 %v215_v26 }
  0xfb   :  { %v2224_v27 = vpop.eup %2223 }
 0x15f   :  { %v226_v28 = vpop.permute.xlu0 %225 }
 0x160   :  { %v228_v29 = vmul.f32 %v2224_v27, %v226_v28 }
 0x162   :  { %230 = vrot.lane.b32.xlu1 %v228_v29, %s2351_s6 }
 0x163   :  { %v221_v30 = vpop.permute.xlu0 %220 }
 0x164   :  { %v223_v31 = vmul.f32 %v2224_v27, %v221_v30 }
 0x1d4   :  { %v231_v32 = vpop.permute.xlu1 %230 }
 0x1d5   :  { %v233_v33 = vadd.f32 %v231_v32, %v223_v31 }
 0x1d7   :  { %2225 = vtanh.f32 %v233_v33  ;;  %v416_v57 = vrot.slane %v233_v33, 6 }
 0x1e1   :  { %v2226_v40 = vpop.eup %2225 }
 0x1e2   :  { %236 = vrot.lane.b32.xlu1 %v2226_v40, %s2350_s25 }
 0x254   :  { %v237_v41 = vpop.permute.xlu1 %236 }
 0x255   :  { %v239_v42 = vmul.f32 %v2224_v27, %v237_v41 }
 0x257   :  { %247 = vrot.lane.b32.xlu0 %v239_v42, %s2351_s6 }
 0x2c9   :  { %v248_v43 = vpop.permute.xlu0 %247 }
 0x2ca   :  { %1939 = vmatmul.mubr.msk.f32.vlgmr.msra.gmra.mrb[2].mxu0 %vm137_vm2, %v248_v43  ;;  %1950 = vmatmul.mubr.msk.f32.vlgmr.msra.gmra.mrb[2].mxu1 %vm137_vm2, %v248_v43 }
 0x2cb   :  { %2130 = vmatpush3.bf16.msra.mxu0 %v2476_v37  ;;  %2136 = vmatpush3.bf16.msra.mxu1 %v2419_v7 }
 0x2cc   :  { %2131 = vmatprep.subr.bf16.mxu0 %v2347_v3  ;;  %2137 = vmatprep.subr.bf16.mxu1 %v2347_v3 }
 0x2cd   :  { %1960 = vmatprep.mubr.msk.f32.mxu0 %vm2348_vm1, %v2349_v10  ;;  %1971 = vmatprep.mubr.msk.f32.mxu1 %vm2348_vm1, %v2349_v10 }
 0x2cf   :  { %2133 = vmatpush3.bf16.msra.mxu0 %v2482_v39  ;;  %2139 = vmatpush3.bf16.msra.mxu1 %v2434_v12 }
 0x2d0   :  { %2140 = vmatprep.subr.bf16.mxu0 %v2347_v3  ;;  %2146 = vmatprep.subr.bf16.mxu1 %v2347_v3 }
 0x39d   :  { %v2503_v44 = vpop.f32.mrb[2].mxu0  ;;  %v400_v45 = vpop.f32.mrb[2].mxu1 }
 0x39e   :  { %v405_v46 = vrot.slane %v400_v45, 6  ;;  %v1940_v47 = vpop.f32.mrb[3].mxu0  ;;  %v1951_v48 = vpop.f32.mrb[3].mxu1 }
 0x3a0   :  { %v407_v49 = vadd.f32 %v405_v46, %v2458_v18 }
 0x3a2   :  { %2227 = vtanh.f32 %v407_v49  ;;  %v1802_v51 = vmul.f32 -1.442695, %v407_v49 }
 0x3a4   :  { %2229 = vpow2.f32 %v1802_v51 }
 0x3ac   :  { %v2228_v50 = vpop.eup %2227 }
 0x3ad   :  { %420 = vrot.lane.b32.xlu1 %v2228_v50, %s2350_s25 }
 0x3ae   :  { %v2230_v52 = vpop.eup %2229 }
 0x3af   :  { %v411_v53 = vadd.f32 1.0, %v2230_v52 }
 0x3b1   :  { %2231 = vrcp.f32 %v411_v53 }
 0x3bb   :  { %v2232_v54 = vpop.eup %2231 }
 0x3bc   :  { %v418_v58 = vmul.f32 %v2232_v54, %v416_v57 }
 0x41f   :  { %v421_v55 = vpop.permute.xlu1 %420 }
 0x420   :  { %v423_v56 = vmul.f32 %v2232_v54, %v421_v55 }
 0x422   :  { %425 = vrot.lane.b32.xlu0 %v423_v56, %s2351_s6 }
 0x494   :  { %v426_v59 = vpop.permute.xlu0 %425 }
 0x495   :  { %v428_v60 = vadd.f32 %v426_v59, %v418_v58 }
 0x497   :  { %2233 = vtanh.f32 %v428_v60  ;;  %v605_v21 = vrot.slane %v428_v60, 6 }
 0x4a1   :  { %v2234_v61 = vpop.eup %2233 }
 0x4a2   :  { %431 = vrot.lane.b32.xlu1 %v2234_v61, %s2350_s25 }
 0x514   :  { %v432_v62 = vpop.permute.xlu1 %431 }
 0x515   :  { %v434_v63 = vmul.f32 %v2232_v54, %v432_v62 }
 0x517   :  { %v436_v0 = vrot.slane %v434_v63, 2 }
 0x519   :  { %437 = vrot.lane.b32.xlu0 %v436_v0, %s2351_s6 }
 0x58b   :  { %v438_v1 = vpop.permute.xlu0 %437 }
 0x58c   :  { %1961 = vmatmul.mubr.msk.f32.vlgmr.msra.gmra.mrb[4].mxu0 %vm137_vm2, %v438_v1  ;;  %1972 = vmatmul.mubr.msk.f32.vlgmr.msra.gmra.mrb[4].mxu1 %vm137_vm2, %v438_v1 }
 0x58d   :  { %2142 = vmatpush3.bf16.msra.mxu0 %v2476_v37  ;;  %2148 = vmatpush3.bf16.msra.mxu1 %v2419_v7 }
 0x58e   :  { %2143 = vmatprep.subr.bf16.mxu0 %v2347_v3  ;;  %2149 = vmatprep.subr.bf16.mxu1 %v2347_v3 }
 0x58f   :  { %1982 = vmatprep.mubr.msk.f32.mxu0 %vm2348_vm1, %v2349_v10  ;;  %1993 = vmatprep.mubr.msk.f32.mxu1 %vm2348_vm1, %v2349_v10 }
 0x591   :  { %2145 = vmatpush3.bf16.msra.mxu0 %v2482_v39  ;;  %2151 = vmatpush3.bf16.msra.mxu1 %v2434_v12 }
 0x592   :  { %2152 = vmatprep.subr.bf16.mxu0 %v2347_v3  ;;  %2158 = vmatprep.subr.bf16.mxu1 %v2347_v3 }
 0x65f   :  { %v2524_v2 = vpop.f32.mrb[4].mxu0  ;;  %v589_v4 = vpop.f32.mrb[4].mxu1 }
 0x660   :  { %v594_v5 = vrot.slane %v589_v4, 4  ;;  %v1962_v6 = vpop.f32.mrb[5].mxu0  ;;  %v1973_v8 = vpop.f32.mrb[5].mxu1 }
 0x662   :  { %v596_v9 = vadd.f32 %v594_v5, %v2458_v18 }
 0x664   :  { %2235 = vtanh.f32 %v596_v9  ;;  %v1805_v13 = vmul.f32 -1.442695, %v596_v9 }
 0x666   :  { %2237 = vpow2.f32 %v1805_v13 }
 0x66e   :  { %v2236_v11 = vpop.eup %2235 }
 0x66f   :  { %609 = vrot.lane.b32.xlu1 %v2236_v11, %s2350_s25 }
 0x670   :  { %v2238_v14 = vpop.eup %2237 }
 0x671   :  { %v600_v15 = vadd.f32 1.0, %v2238_v14 }
 0x673   :  { %2239 = vrcp.f32 %v600_v15 }
 0x67d   :  { %v2240_v17 = vpop.eup %2239 }
 0x67e   :  { %v607_v22 = vmul.f32 %v2240_v17, %v605_v21 }
 0x6e1   :  { %v610_v19 = vpop.permute.xlu1 %609 }
 0x6e2   :  { %v612_v20 = vmul.f32 %v2240_v17, %v610_v19 }
 0x6e4   :  { %614 = vrot.lane.b32.xlu0 %v612_v20, %s2351_s6 }
 0x756   :  { %v615_v23 = vpop.permute.xlu0 %614 }
 0x757   :  { %v617_v24 = vadd.f32 %v615_v23, %v607_v22 }
 0x759   :  { %2241 = vtanh.f32 %v617_v24  ;;  %v794_v46 = vrot.slane %v617_v24, 6 }
 0x763   :  { %v2242_v25 = vpop.eup %2241 }
 0x764   :  { %620 = vrot.lane.b32.xlu1 %v2242_v25, %s2350_s25 }
 0x7d6   :  { %v621_v26 = vpop.permute.xlu1 %620 }
 0x7d7   :  { %v623_v27 = vmul.f32 %v2240_v17, %v621_v26 }
 0x7d9   :  { %v625_v28 = vrot.slane %v623_v27, 4 }
 0x7db   :  { %626 = vrot.lane.b32.xlu0 %v625_v28, %s2351_s6 }
 0x84d   :  { %v627_v29 = vpop.permute.xlu0 %626 }
 0x84e   :  { %1983 = vmatmul.mubr.msk.f32.vlgmr.msra.gmra.mrb[6].mxu0 %vm137_vm2, %v627_v29  ;;  %1994 = vmatmul.mubr.msk.f32.vlgmr.msra.gmra.mrb[6].mxu1 %vm137_vm2, %v627_v29 }
 0x84f   :  { %2154 = vmatpush3.bf16.msra.mxu0 %v2476_v37  ;;  %2160 = vmatpush3.bf16.msra.mxu1 %v2419_v7 }
 0x850   :  { %2155 = vmatprep.subr.bf16.mxu0 %v2347_v3  ;;  %2161 = vmatprep.subr.bf16.mxu1 %v2347_v3 }
 0x851   :  { %2004 = vmatprep.mubr.msk.f32.mxu0 %vm2348_vm1, %v2349_v10  ;;  %2015 = vmatprep.mubr.msk.f32.mxu1 %vm2348_vm1, %v2349_v10 }
 0x853   :  { %2157 = vmatpush3.bf16.msra.mxu0 %v2482_v39  ;;  %2163 = vmatpush3.bf16.msra.mxu1 %v2434_v12 }
 0x854   :  { %2164 = vmatprep.subr.bf16.mxu0 %v2347_v3  ;;  %2170 = vmatprep.subr.bf16.mxu1 %v2347_v3 }
 0x921   :  { %v2545_v30 = vpop.f32.mrb[6].mxu0  ;;  %v778_v31 = vpop.f32.mrb[6].mxu1 }
 0x922   :  { %v783_v32 = vrot.slane %v778_v31, 2  ;;  %v1984_v33 = vpop.f32.mrb[7].mxu0  ;;  %v1995_v34 = vpop.f32.mrb[7].mxu1 }
 0x924   :  { %v785_v35 = vadd.f32 %v783_v32, %v2458_v18 }
 0x926   :  { %2243 = vtanh.f32 %v785_v35  ;;  %v1808_v38 = vmul.f32 -1.442695, %v785_v35 }
 0x928   :  { %2245 = vpow2.f32 %v1808_v38 }
 0x930   :  { %v2244_v36 = vpop.eup %2243 }
 0x931   :  { %798 = vrot.lane.b32.xlu1 %v2244_v36, %s2350_s25 }
 0x932   :  { %v2246_v40 = vpop.eup %2245 }
 0x933   :  { %v789_v41 = vadd.f32 1.0, %v2246_v40 }
 0x935   :  { %2247 = vrcp.f32 %v789_v41 }
 0x93f   :  { %v2248_v42 = vpop.eup %2247 }
 0x940   :  { %v796_v47 = vmul.f32 %v2248_v42, %v794_v46 }
 0x9a3   :  { %v799_v43 = vpop.permute.xlu1 %798 }
 0x9a4   :  { %v801_v45 = vmul.f32 %v2248_v42, %v799_v43 }
 0x9a6   :  { %803 = vrot.lane.b32.xlu0 %v801_v45, %s2351_s6 }
 0xa18   :  { %v804_v48 = vpop.permute.xlu0 %803 }
 0xa19   :  { %v806_v49 = vadd.f32 %v804_v48, %v796_v47 }
 0xa1b   :  { %2249 = vtanh.f32 %v806_v49  ;;  %v980_v4 = vrot.slane %v806_v49, 6 }
 0xa25   :  { %v2250_v18 = vpop.eup %2249 }
 0xa26   :  { %809 = vrot.lane.b32.xlu1 %v2250_v18, %s2350_s25 }
 0xa98   :  { %v810_v50 = vpop.permute.xlu1 %809 }
 0xa99   :  { %v812_v51 = vmul.f32 %v2248_v42, %v810_v50 }
 0xa9b   :  { %v814_v52 = vrot.slane %v812_v51, 6 }
 0xa9d   :  { %815 = vrot.lane.b32.xlu0 %v814_v52, %s2351_s6 }
 0xb0f   :  { %v816_v53 = vpop.permute.xlu0 %815 }
 0xb10   :  { %2005 = vmatmul.mubr.msk.f32.vlgmr.msra.gmra.mrb[8].mxu0 %vm137_vm2, %v816_v53  ;;  %2016 = vmatmul.mubr.msk.f32.vlgmr.msra.gmra.mrb[8].mxu1 %vm137_vm2, %v816_v53 }
 0xb11   :  { %2166 = vmatpush3.bf16.msra.mxu0 %v2476_v37  ;;  %2172 = vmatpush3.bf16.msra.mxu1 %v2419_v7 }
 0xb12   :  { %2167 = vmatprep.subr.bf16.mxu0 %v2347_v3  ;;  %2173 = vmatprep.subr.bf16.mxu1 %v2347_v3 }
 0xb13   :  { %2026 = vmatprep.mubr.msk.f32.mxu0 %vm2348_vm1, %v2349_v10  ;;  %2037 = vmatprep.mubr.msk.f32.mxu1 %vm2348_vm1, %v2349_v10 }
 0xb15   :  { %2169 = vmatpush3.bf16.msra.mxu0 %v2482_v39  ;;  %2175 = vmatpush3.bf16.msra.mxu1 %v2434_v12 }
 0xb16   :  { %2176 = vmatprep.subr.bf16.mxu0 %v2347_v3  ;;  %2182 = vmatprep.subr.bf16.mxu1 %v2347_v3 }
 0xbe3   :  { %v2566_v54 = vpop.f32.mrb[8].mxu0  ;;  %v967_v55 = vpop.f32.mrb[8].mxu1 }
 0xbe4   :  { %v971_v56 = vadd.f32 %v967_v55, %v2456_v16  ;;  %v2006_v57 = vpop.f32.mrb[9].mxu0  ;;  %v2017_v58 = vpop.f32.mrb[9].mxu1 }
 0xbe6   :  { %2251 = vtanh.f32 %v971_v56  ;;  %v1811_v60 = vmul.f32 -1.442695, %v971_v56 }
 0xbe8   :  { %2253 = vpow2.f32 %v1811_v60 }
 0xbf0   :  { %v2252_v59 = vpop.eup %2251 }
 0xbf1   :  { %984 = vrot.lane.b32.xlu1 %v2252_v59, %s2350_s25 }
 0xbf2   :  { %v2254_v61 = vpop.eup %2253 }
 0xbf3   :  { %v975_v62 = vadd.f32 1.0, %v2254_v61 }
 0xbf5   :  { %2255 = vrcp.f32 %v975_v62 }
 0xbff   :  { %v2256_v63 = vpop.eup %2255 }
 0xc00   :  { %v982_v5 = vmul.f32 %v2256_v63, %v980_v4 }
 0xc63   :  { %v985_v0 = vpop.permute.xlu1 %984 }
 0xc64   :  { %v987_v1 = vmul.f32 %v2256_v63, %v985_v0 }
 0xc66   :  { %989 = vrot.lane.b32.xlu0 %v987_v1, %s2351_s6 }
 0xcd8   :  { %v990_v6 = vpop.permute.xlu0 %989 }
 0xcd9   :  { %v992_v8 = vadd.f32 %v990_v6, %v982_v5 }
 0xcdb   :  { %2257 = vtanh.f32 %v992_v8  ;;  %v1168_v31 = vrot.slane %v992_v8, 6 }
 0xce5   :  { %v2258_v9 = vpop.eup %2257 }
 0xce6   :  { %995 = vrot.lane.b32.xlu1 %v2258_v9, %s2350_s25 }
 0xd58   :  { %v996_v11 = vpop.permute.xlu1 %995 }
 0xd59   :  { %v998_v13 = vmul.f32 %v2256_v63, %v996_v11 }
 0xd5b   :  { %1000 = vrot.lane.b32.xlu0 %v998_v13, %s2351_s6 }
 0xdcd   :  { %v1001_v14 = vpop.permute.xlu0 %1000 }
 0xdce   :  { %2027 = vmatmul.mubr.msk.f32.vlgmr.msra.gmra.mrb[10].mxu0 %vm137_vm2, %v1001_v14  ;;  %2038 = vmatmul.mubr.msk.f32.vlgmr.msra.gmra.mrb[10].mxu1 %vm137_vm2, %v1001_v14 }
 0xdcf   :  { %2178 = vmatpush3.bf16.msra.mxu0 %v2476_v37  ;;  %2184 = vmatpush3.bf16.msra.mxu1 %v2419_v7 }
 0xdd0   :  { %2179 = vmatprep.subr.bf16.mxu0 %v2347_v3  ;;  %2185 = vmatprep.subr.bf16.mxu1 %v2347_v3 }
 0xdd1   :  { %2048 = vmatprep.mubr.msk.f32.mxu0 %vm2348_vm1, %v2349_v10  ;;  %2059 = vmatprep.mubr.msk.f32.mxu1 %vm2348_vm1, %v2349_v10 }
 0xdd3   :  { %2181 = vmatpush3.bf16.msra.mxu0 %v2482_v39  ;;  %2187 = vmatpush3.bf16.msra.mxu1 %v2434_v12 }
 0xdd4   :  { %2188 = vmatprep.subr.bf16.mxu0 %v2347_v3  ;;  %2194 = vmatprep.subr.bf16.mxu1 %v2347_v3 }
 0xea1   :  { %v2587_v15 = vpop.f32.mrb[10].mxu0  ;;  %v1152_v17 = vpop.f32.mrb[10].mxu1 }
 0xea2   :  { %v1157_v19 = vrot.slane %v1152_v17, 6  ;;  %v2028_v20 = vpop.f32.mrb[11].mxu0  ;;  %v2039_v21 = vpop.f32.mrb[11].mxu1 }
 0xea3   :  { %v2638_v21 = vld [vmem:[%s2730_s8] ss:$0 sm:$0xff] }
 0xea4   :  { %v1159_v22 = vadd.f32 %v1157_v19, %v2456_v16 }
 0xea6   :  { %2259 = vtanh.f32 %v1159_v22  ;;  %v1814_v24 = vmul.f32 -1.442695, %v1159_v22  ;;  %v318_v22 = vadd.f32 %v2638_v21, %v2503_v44  ;;  %v508_v44 = vadd.f32 %v2638_v21, %v2524_v2 }
 0xea8   :  { %2261 = vpow2.f32 %v1814_v24 }
 0xeb0   :  { %v2260_v23 = vpop.eup %2259 }
 0xeb1   :  { %1172 = vrot.lane.b32.xlu1 %v2260_v23, %s2350_s25  ;;  %v322_v23 = vsel %vm321_vm3, %v318_v22, -inf }
 0xeb2   :  { %v2262_v25 = vpop.eup %2261 }
 0xeb3   :  { %v1163_v26 = vadd.f32 1.0, %v2262_v25 }
 0xeb5   :  { %2263 = vrcp.f32 %v1163_v26 }
 0xebf   :  { %v2264_v27 = vpop.eup %2263 }
 0xec0   :  { %v1170_v32 = vmul.f32 %v2264_v27, %v1168_v31 }
 0xf23   :  { %v1173_v28 = vpop.permute.xlu1 %1172 }
 0xf24   :  { %v1175_v29 = vmul.f32 %v2264_v27, %v1173_v28 }
 0xf26   :  { %1177 = vrot.lane.b32.xlu0 %v1175_v29, %s2351_s6 }
 0xf98   :  { %v1178_v33 = vpop.permute.xlu0 %1177 }
 0xf99   :  { %v1180_v34 = vadd.f32 %v1178_v33, %v1170_v32  ;;  %v1658_v33 = vcombine.low %v2638_v21, %v2638_v21 }
 0xf9b   :  { %2265 = vtanh.f32 %v1180_v34  ;;  %v1357_v53 = vrot.slane %v1180_v34, 6 }
 0xfa5   :  { %v2266_v35 = vpop.eup %2265 }
 0xfa6   :  { %1183 = vrot.lane.b32.xlu1 %v2266_v35, %s2350_s25 }
0x1018   :  { %v1184_v36 = vpop.permute.xlu1 %1183 }
0x1019   :  { %v1186_v38 = vmul.f32 %v2264_v27, %v1184_v36 }
0x101b   :  { %v1188_v40 = vrot.slane %v1186_v38, 2  ;;  %v697_v38 = vadd.f32 %v2638_v21, %v2545_v30 }
0x101d   :  { %1189 = vrot.lane.b32.xlu0 %v1188_v40, %s2351_s6  ;;  %v511_v40 = vsel %vm321_vm3, %v508_v44, -inf }
0x108f   :  { %v1190_v41 = vpop.permute.xlu0 %1189 }
0x1090   :  { %2049 = vmatmul.mubr.msk.f32.vlgmr.msra.gmra.mrb[12].mxu0 %vm137_vm2, %v1190_v41  ;;  %2060 = vmatmul.mubr.msk.f32.vlgmr.msra.gmra.mrb[12].mxu1 %vm137_vm2, %v1190_v41 }
0x1091   :  { %2190 = vmatpush3.bf16.msra.mxu0 %v2476_v37  ;;  %2196 = vmatpush3.bf16.msra.mxu1 %v2419_v7 }
0x1092   :  { %2191 = vmatprep.subr.bf16.mxu0 %v2347_v3  ;;  %2197 = vmatprep.subr.bf16.mxu1 %v2347_v3 }
0x1093   :  { %2070 = vmatprep.mubr.msk.f32.mxu0 %vm2348_vm1, %v2349_v10  ;;  %2081 = vmatprep.mubr.msk.f32.mxu1 %vm2348_vm1, %v2349_v10 }
0x1095   :  { %2193 = vmatpush3.bf16.msra.mxu0 %v2482_v39  ;;  %2199 = vmatpush3.bf16.msra.mxu1 %v2434_v12 }
0x1096   :  { %2206 = vmatprep.subr.bf16.mxu1 %v2347_v3  ;;  %2200 = vmatprep.subr.bf16.mxu0 %v2347_v3 }
0x1163   :  { %v2608_v42 = vpop.f32.mrb[12].mxu0  ;;  %v1341_v7 = vpop.f32.mrb[12].mxu1 }
0x1164   :  { %v1346_v43 = vrot.slane %v1341_v7, 4  ;;  %v2050_v45 = vpop.f32.mrb[13].mxu0  ;;  %v2061_v46 = vpop.f32.mrb[13].mxu1  ;;  %v700_v7 = vsel %vm321_vm3, %v697_v38, -inf }
0x1166   :  { %v1348_v47 = vadd.f32 %v1346_v43, %v2456_v16  ;;  %v1071_v43 = vadd.f32 %v2638_v21, %v2587_v15 }
0x1168   :  { %2267 = vtanh.f32 %v1348_v47  ;;  %v1817_v49 = vmul.f32 -1.442695, %v1348_v47  ;;  %v1074_v45 = vsel %vm321_vm3, %v1071_v43, -inf }
0x116a   :  { %2269 = vpow2.f32 %v1817_v49 }
0x1172   :  { %v2268_v48 = vpop.eup %2267 }
0x1173   :  { %1361 = vrot.lane.b32.xlu1 %v2268_v48, %s2350_s25 }
0x1174   :  { %v2270_v18 = vpop.eup %2269 }
0x1175   :  { %v1352_v12 = vadd.f32 1.0, %v2270_v18 }
0x1177   :  { %2271 = vrcp.f32 %v1352_v12 }
0x1181   :  { %v2272_v50 = vpop.eup %2271 }
0x1182   :  { %v1359_v55 = vmul.f32 %v2272_v50, %v1357_v53 }
0x11e5   :  { %v1362_v51 = vpop.permute.xlu1 %1361 }
0x11e6   :  { %v1364_v52 = vmul.f32 %v2272_v50, %v1362_v51 }
0x11e8   :  { %1366 = vrot.lane.b32.xlu0 %v1364_v52, %s2351_s6 }
0x125a   :  { %v1367_v56 = vpop.permute.xlu0 %1366 }
0x125b   :  { %v1369_v57 = vadd.f32 %v1367_v56, %v1359_v55 }
0x125d   :  { %2273 = vtanh.f32 %v1369_v57 }
0x1267   :  { %v2274_v58 = vpop.eup %2273 }
0x1268   :  { %1372 = vrot.lane.b32.xlu1 %v2274_v58, %s2350_s25 }
0x12da   :  { %v1373_v59 = vpop.permute.xlu1 %1372 }
0x12db   :  { %v1375_v60 = vmul.f32 %v2272_v50, %v1373_v59 }
0x12dd   :  { %v1377_v61 = vrot.slane %v1375_v60, 4 }
0x12df   :  { %1378 = vrot.lane.b32.xlu0 %v1377_v61, %s2351_s6 }
0x1351   :  { %v1379_v62 = vpop.permute.xlu0 %1378 }
0x1352   :  { %2071 = vmatmul.mubr.msk.f32.vlgmr.msra.gmra.mrb[14].mxu0 %vm137_vm2, %v1379_v62  ;;  %2082 = vmatmul.mubr.msk.f32.vlgmr.msra.gmra.mrb[14].mxu1 %vm137_vm2, %v1379_v62 }
0x1353   :  { %2208 = vmatpush3.bf16.msra.mxu1 %v2476_v37  ;;  %2103 = vmatprep.mubr.msk.f32.mxu1 %vm2348_vm1, %v2349_v10 }
0x1354   :  { %2209 = vmatprep.subr.bf16.mxu1 %v2347_v3  ;;  %2202 = vmatpush3.bf16.msra.mxu0 %v2476_v37 }
0x1355   :  { %2203 = vmatprep.subr.bf16.mxu0 %v2347_v3  ;;  %2092 = vmatprep.mubr.msk.f32.mxu0 %vm2348_vm1, %v2349_v10  ;;  %v2218_v10 = vld [vmem:[%s2725_s3] sm:$0xff]   ;;  %s2352_s3 = smov [#allocation2]  }
0x1356   :  { %s1786_s8 = sshll.u32 %s2352_s3, 4  ;;  %s1787_s8 = int_to_ptr.vmem [resolvable:$true] %s1786_s8 }
0x1357   :  { %2211 = vmatpush3.bf16.msra.mxu1 %v2482_v39  ;;  %s2323_s17 = scalar_lea.vmem %s1787_s8, 32  ;;  %p2328_p1 = scmp.lt.s32.totalorder %s1787_s8, %s1787_s8 }
0x1358   :  { %2205 = vmatpush3.bf16.msra.mxu0 %v2482_v39  ;;  %p2324_p0 = scmp.ne.s32.totalorder %s1787_s8, %s2323_s17  ;;  %p2329_p2 = scmp.lt.s32.totalorder %s2323_s17, %s2323_s17 }
0x135a   :  { %2104 = vmatmul.mubr.msk.f32.vlgmr.msra.gmra.mrb[16].mxu1 %vm137_vm2, %v2218_v10  ;;  %p2330_p3 = por %p2329_p2, %p2328_p1 }
0x135c   :  { %p2331_p4 = pnand %p2330_p3, %p2324_p0 }
0x1425   :  { %v1448_v63 = vpop.f32.mrb[14].mxu0  ;;  %v1530_v0 = vpop.f32.mrb[14].mxu1 }
0x1426   :  { %v1535_v1 = vrot.slane %v1530_v0, 2  ;;  %v2072_v4 = vpop.f32.mrb[15].mxu0  ;;  %v2083_v5 = vpop.f32.mrb[15].mxu1  ;;  %v1449_v30 = vadd.f32 %v2638_v21, %v1448_v63  ;;  %v886_v0 = vadd.f32 %v2638_v21, %v2566_v54 }
0x1427   :  { %v1260_v4 = vadd.f32 %v2638_v21, %v2608_v42 }
0x1428   :  { %v1537_v6 = vadd.f32 %v1535_v1, %v2456_v16  ;;  %v1546_v16 = vrot.slane %v1369_v57, 6  ;;  %v1452_v46 = vsel %vm321_vm3, %v1449_v30, -inf  ;;  %v889_v5 = vsel %vm321_vm3, %v886_v0, -inf }
0x142a   :  { %2275 = vtanh.f32 %v1537_v6  ;;  %v1820_v37 = vmul.f32 -1.442695, %v1537_v6 }
0x142c   :  { %2277 = vpow2.f32 %v1820_v37 }
0x142d   :  { %v1728_v24 = vpop.f32.mrb[16].mxu1 }
0x142e   :  { %v2105_v25 = vpop.f32.mrb[17].mxu1  ;;  %v2652_v36 = vadd.f32 %v1728_v24, %v1658_v33 }
0x1430   :  { %v2659_v41 = vcombine.high %v2652_v36, %v2652_v36  ;;  %v1736_v61 = vsel %vm1735_vm4, %v2652_v36, -inf }
0x1432   :  { %v1739_v2 = vsel %vm1735_vm4, %v2659_v41, -inf }
0x1434   :  { %v2276_v8 = vpop.eup %2275 }
0x1435   :  { %1550 = vrot.lane.b32.xlu1 %v2276_v8, %s2350_s25  ;;  %v1263_v8 = vsel %vm321_vm3, %v1260_v4, -inf }
0x1436   :  { %v2278_v3 = vpop.eup %2277 }
0x1437   :  { %v1541_v9 = vadd.f32 1.0, %v2278_v3 }
0x1439   :  { %2279 = vrcp.f32 %v1541_v9 }
0x1443   :  { %v2280_v39 = vpop.eup %2279 }
0x1444   :  { %v1548_v14 = vmul.f32 %v2280_v39, %v1546_v16 }
0x14a7   :  { %v1551_v11 = vpop.permute.xlu1 %1550 }
0x14a8   :  { %v1553_v13 = vmul.f32 %v2280_v39, %v1551_v11 }
0x14aa   :  { %1555 = vrot.lane.b32.xlu0 %v1553_v13, %s2351_s6 }
0x151c   :  { %v1556_v17 = vpop.permute.xlu0 %1555 }
0x151d   :  { %v1558_v19 = vadd.f32 %v1556_v17, %v1548_v14 }
0x151f   :  { %2281 = vtanh.f32 %v1558_v19 }
0x1529   :  { %v2282_v20 = vpop.eup %2281 }
0x152a   :  { %1561 = vrot.lane.b32.xlu1 %v2282_v20, %s2350_s25 }
0x154e   :  { %323 = vmax.xlane.f32.xlu1 %v322_v23 }
0x159c   :  { %v1562_v26 = vpop.permute.xlu1 %1561 }
0x159d   :  { %v1564_v27 = vmul.f32 %v2280_v39, %v1562_v26 }
0x159f   :  { %v1566_v28 = vrot.slane %v1564_v27, 6 }
0x15a1   :  { %1567 = vrot.lane.b32.xlu0 %v1566_v28, %s2351_s6 }
0x15db   :  { %v324_v29 = vpop.xlane.xlu1 %323 }
0x15dc   :  { %v325_v31 = vsub.f32 %v318_v22, %v324_v29 }
0x15de   :  { %v326_v32 = vmul.f32 1.442695, %v325_v31 }
0x15e0   :  { %2283 = vpow2.f32 %v326_v32 }
0x15ea   :  { %v2646_v34 = vpop.eup %2283 }
0x15eb   :  { %v328_v35 = vsel %vm321_vm3, %v2646_v34, 0.0 }
0x15ec   :  { %329 = vadd.xlane.f32.xlu0 %v328_v35 }
0x15f0   :  { %512 = vmax.xlane.f32.xlu0 %v511_v40 }
0x15f4   :  { %701 = vmax.xlane.f32.xlu0 %v700_v7 }
0x15f8   :  { %1740 = vmax.xlane.f32.xlu0 %v1739_v2 }
0x15fc   :  { %1075 = vmax.xlane.f32.xlu0 %v1074_v45 }
0x1600   :  { %1453 = vmax.xlane.f32.xlu0 %v1452_v46 }
0x1613   :  { %v1568_v47 = vpop.permute.xlu0 %1567 }
0x1614   :  { %2093 = vmatmul.mubr.msk.f32.vlgmr.msra.gmra.mrb[16].mxu0 %vm137_vm2, %v1568_v47 }
0x1679   :  { %v330_v48 = vpop.xlane.xlu0 %329 }
0x167d   :  { %v513_v49 = vpop.xlane.xlu0 %512 }
0x167e   :  { %v514_v18 = vsub.f32 %v508_v44, %v513_v49 }
0x1680   :  { %v515_v12 = vmul.f32 1.442695, %v514_v18 }
0x1681   :  { %v702_v50 = vpop.xlane.xlu0 %701 }
0x1682   :  { %2285 = vpow2.f32 %v515_v12  ;;  %v703_v51 = vsub.f32 %v697_v38, %v702_v50 }
0x1684   :  { %v704_v15 = vmul.f32 1.442695, %v703_v51 }
0x1685   :  { %v2670_v52 = vpop.xlane.xlu0 %1740 }
0x1686   :  { %2287 = vpow2.f32 %v704_v15 }
0x1689   :  { %v1076_v53 = vpop.xlane.xlu0 %1075 }
0x168a   :  { %v1077_v55 = vsub.f32 %v1071_v43, %v1076_v53 }
0x168c   :  { %v2286_v56 = vpop.eup %2285  ;;  %v1078_v57 = vmul.f32 1.442695, %v1077_v55 }
0x168d   :  { %v1454_v58 = vpop.xlane.xlu0 %1453  ;;  %v517_v59 = vsel %vm321_vm3, %v2286_v56, 0.0 }
0x168e   :  { %2289 = vpow2.f32 %v1078_v57  ;;  %v1455_v60 = vsub.f32 %v1449_v30, %v1454_v58  ;;  %518 = vadd.xlane.f32.xlu1 %v517_v59 }
0x1690   :  { %v2675_v62 = vpop.eup %2287  ;;  %v1456_v63 = vmul.f32 1.442695, %v1455_v60 }
0x1691   :  { %v706_v1 = vsel %vm321_vm3, %v2675_v62, 0.0 }
0x1692   :  { %2291 = vpow2.f32 %v1456_v63  ;;  %1737 = vmax.xlane.f32.xlu1 %v1736_v61  ;;  %707 = vadd.xlane.f32.xlu0 %v706_v1 }
0x1693   :  { %2293 = vrcp.f32 %v330_v48 }
0x1696   :  { %890 = vmax.xlane.f32.xlu1 %v889_v5 }
0x1698   :  { %v2684_v6 = vpop.eup %2289 }
0x1699   :  { %v1080_v37 = vsel %vm321_vm3, %v2684_v6, 0.0 }
0x169a   :  { %1264 = vmax.xlane.f32.xlu1 %v1263_v8  ;;  %1081 = vadd.xlane.f32.xlu0 %v1080_v37 }
0x169c   :  { %v2689_v54 = vpop.eup %2291 }
0x169d   :  { %v1458_v3 = vsel %vm321_vm3, %v2689_v54, 0.0  ;;  %v2294_v19 = vpop.eup %2293 }
0x169e   :  { %1459 = vadd.xlane.f32.xlu0 %v1458_v3  ;;  %v332_v24 = vmul.f32 %v2294_v19, %v2646_v34  ;;  %v1743_v34 = vsub.f32 %v2659_v41, %v2670_v52 }
0x16a0   :  { %v1746_v40 = vmul.f32 1.442695, %v1743_v34 }
0x16e7   :  { %v1637_v9 = vpop.f32.mrb[16].mxu0 }
0x16e8   :  { %v1638_v42 = vadd.f32 %v2638_v21, %v1637_v9  ;;  %v2094_v10 = vpop.f32.mrb[17].mxu0 }
0x16ea   :  { %v1641_v39 = vsel %vm321_vm3, %v1638_v42, -inf }
0x16eb   :  { %1642 = vmax.xlane.f32.xlu1 %v1641_v39 }
0x171b   :  { %v519_v11 = vpop.xlane.xlu1 %518 }
0x171c   :  { %2295 = vrcp.f32 %v519_v11 }
0x171f   :  { %v1738_v13 = vpop.xlane.xlu1 %1737  ;;  %v708_v46 = vpop.xlane.xlu0 %707 }
0x1720   :  { %v1742_v16 = vsub.f32 %v2652_v36, %v1738_v13 }
0x1722   :  { %v1744_v14 = vmul.f32 1.442695, %v1742_v16 }
0x1723   :  { %v891_v17 = vpop.xlane.xlu1 %890 }
0x1724   :  { %2297 = vpow2.f32 %v1744_v14  ;;  %v892_v20 = vsub.f32 %v886_v0, %v891_v17 }
0x1726   :  { %v2296_v22 = vpop.eup %2295  ;;  %v893_v23 = vmul.f32 1.442695, %v892_v20 }
0x1727   :  { %v521_v21 = vmul.f32 %v2296_v22, %v2286_v56  ;;  %v1265_v25 = vpop.xlane.xlu1 %1264  ;;  %v1082_v47 = vpop.xlane.xlu0 %1081 }
0x1728   :  { %2299 = vpow2.f32 %v893_v23  ;;  %v1266_v26 = vsub.f32 %v1260_v4, %v1265_v25 }
0x1729   :  { %v522_v27 = vadd.f32 %v521_v21, %v332_v24 }
0x172a   :  { %v1267_v28 = vmul.f32 1.442695, %v1266_v26 }
0x172b   :  { %v1460_v48 = vpop.xlane.xlu0 %1459 }
0x172c   :  { %2301 = vpow2.f32 %v1267_v28 }
0x172e   :  { %v2298_v29 = vpop.eup %2297 }
0x172f   :  { %v1748_v31 = vsel %vm1735_vm4, %v2298_v29, 0.0 }
0x1730   :  { %1749 = vadd.xlane.f32.xlu0 %v1748_v31 }
0x1732   :  { %v2300_v32 = vpop.eup %2299 }
0x1733   :  { %v895_v33 = vsel %vm321_vm3, %v2300_v32, 0.0 }
0x1734   :  { %896 = vadd.xlane.f32.xlu1 %v895_v33 }
0x1736   :  { %v2302_v44 = vpop.eup %2301 }
0x1737   :  { %v1269_v35 = vsel %vm321_vm3, %v2302_v44, 0.0 }
0x1738   :  { %1270 = vadd.xlane.f32.xlu1 %v1269_v35 }
0x1778   :  { %v1643_v36 = vpop.xlane.xlu1 %1642 }
0x1779   :  { %v1644_v38 = vsub.f32 %v1638_v42, %v1643_v36 }
0x177b   :  { %v1645_v7 = vmul.f32 1.442695, %v1644_v38 }
0x177d   :  { %2303 = vpow2.f32 %v1645_v7 }
0x177e   :  { %2305 = vpow2.f32 %v1746_v40 }
0x1787   :  { %v2304_v2 = vpop.eup %2303 }
0x1788   :  { %v1647_v43 = vsel %vm321_vm3, %v2304_v2, 0.0  ;;  %v2306_v30 = vpop.eup %2305 }
0x1789   :  { %1648 = vadd.xlane.f32.xlu1 %v1647_v43  ;;  %v1751_v45 = vsel %vm1735_vm4, %v2306_v30, 0.0 }
0x178d   :  { %1752 = vadd.xlane.f32.xlu1 %v1751_v45 }
0x17bd   :  { %v1750_v49 = vpop.xlane.xlu0 %1749 }
0x17be   :  { %2307 = vrcp.f32 %v1750_v49 }
0x17bf   :  { %2309 = vrcp.f32 %v708_v46 }
0x17c1   :  { %v897_v41 = vpop.xlane.xlu1 %896 }
0x17c2   :  { %2311 = vrcp.f32 %v897_v41 }
0x17c3   :  { %2313 = vrcp.f32 %v1082_v47 }
0x17c5   :  { %v1271_v18 = vpop.xlane.xlu1 %1270 }
0x17c8   :  { %v2308_v12 = vpop.eup %2307 }
0x17c9   :  { %v1755_v51 = vmul.f32 %v2308_v12, %v2298_v29  ;;  %v2310_v53 = vpop.eup %2309 }
0x17ca   :  { %v710_v57 = vmul.f32 %v2310_v53, %v2675_v62 }
0x17cb   :  { %v1758_v52 = vsel %vm1735_vm4, %v1755_v51, 0.0 }
0x17cc   :  { %v2312_v55 = vpop.eup %2311  ;;  %v1759_v56 = vrot.slane %v1758_v52, 4  ;;  %v711_v61 = vadd.f32 %v710_v57, %v522_v27 }
0x17cd   :  { %v899_v58 = vmul.f32 %v2312_v55, %v2300_v32  ;;  %v2314_v60 = vpop.eup %2313 }
0x17ce   :  { %v1760_v59 = vadd.f32 %v1759_v56, %v1758_v52  ;;  %v1084_v8 = vmul.f32 %v2314_v60, %v2684_v6 }
0x17cf   :  { %v900_v0 = vadd.f32 %v899_v58, %v711_v61 }
0x17d0   :  { %v1761_v5 = vrot.slane %v1760_v59, 2 }
0x17d1   :  { %v1085_v42 = vadd.f32 %v1084_v8, %v900_v0 }
0x17d2   :  { %v1762_v10 = vadd.f32 %v1761_v5, %v1760_v59 }
0x17d4   :  { %v1763_v14 = vrot.slane %v1762_v10, 1 }
0x17d6   :  { %v1764_v6 = vadd.f32 %v1763_v14, %v1762_v10 }
0x1816   :  { %v1649_v50 = vpop.xlane.xlu1 %1648 }
0x181a   :  { %v1753_v15 = vpop.xlane.xlu1 %1752 }
0x181b   :  { %2315 = vrcp.f32 %v1753_v15 }
0x181c   :  { %2317 = vrcp.f32 %v1271_v18 }
0x181d   :  { %2319 = vrcp.f32 %v1460_v48 }
0x181e   :  { %2321 = vrcp.f32 %v1649_v50 }
0x1825   :  { %v2316_v63 = vpop.eup %2315 }
0x1826   :  { %v1757_v1 = vmul.f32 %v2316_v63, %v2306_v30  ;;  %v2318_v4 = vpop.eup %2317 }
0x1827   :  { %v1273_v9 = vmul.f32 %v2318_v4, %v2302_v44  ;;  %v2320_v39 = vpop.eup %2319 }
0x1828   :  { %v1765_v37 = vsel %vm1735_vm4, %v1757_v1, 0.0  ;;  %v2322_v11 = vpop.eup %2321  ;;  %v1462_v19 = vmul.f32 %v2320_v39, %v2689_v54 }
0x1829   :  { %v1766_v3 = vrot.slane %v1765_v37, 4  ;;  %v1274_v16 = vadd.f32 %v1273_v9, %v1085_v42  ;;  %v1651_v20 = vmul.f32 %v2322_v11, %v2304_v2 }
0x182b   :  { %v1767_v62 = vadd.f32 %v1766_v3, %v1765_v37  ;;  %v1463_v23 = vadd.f32 %v1462_v19, %v1274_v16 }
0x182d   :  { %v1768_v13 = vrot.slane %v1767_v62, 2  ;;  %v1652_v21 = vadd.f32 %v1651_v20, %v1463_v23 }
0x182f   :  { %v1769_v17 = vadd.f32 %v1768_v13, %v1767_v62 }
0x1831   :  { %v1770_v22 = vrot.slane %v1769_v17, 1 }
0x1833   :  { %v1771_v24 = vadd.f32 %v1770_v22, %v1769_v17 }
0x1835   :  { %v1775_v25 = vsel %vm1774_vm5, %v1771_v24, %v1764_v6 }
0x1836   :  { %v1777_v26 = vadd.f32 %v1775_v25, %v1652_v21 }
0x1838   :  { %v1778_v27 = vmul.f32 0.083333336, %v1777_v26 }
0x183a   :  { %1779 = vst.msk [vmem:[#allocation2] sm:$0x3] %vm321_vm3, %v1778_v27 }
0x183b   :  { %2334 = shalt.err (!%p2331_p4)
}
0x183c   :  { %s2335_s19 = scalar_lea.hbm %s2731_s9, 32 }
0x183d   :  { %p2336_p5 = scmp.ne.s32.totalorder %s2731_s9, %s2335_s19  ;;  %p2339_p6 = scmp.lt.u32.totalorder %s2335_s19, %s2731_s9 }
0x183f   :  { %p2341_p7 = pnand %p2339_p6, %p2336_p5 }
0x1841   :  { %2344 = shalt.err (!%p2341_p7)
}
0x1842   :  { %1789 = dma.vmem_to_hbm [thread:$0]  %s1787_s8, 32, %s2731_s9, [#allocation3]  }
0x1843   :  { %2345 = dma.done.wait [#allocation3], 32  }
0x1844   :  { %2346 = vsyncadd [#allocation3], 4294967264 }
0x1845   :  { %1793 = vsyncpa [#allocation3], 1 }

</bundles_post_ra>
